<compile_context>
chip_gen: v6e
topology: v6e:2x2x1
jax: 0.10.0
libtpu: 0.0.40
codegen_flags: <defaults>
</compile_context>

<pallas_src>
import functools
import math

import jax
import jax.numpy as jnp
from jax.experimental import pallas as pl
from jax.experimental.pallas import tpu as pltpu


# ----------------------------------------------------------------------------
# Pallas kernel: one grid step == one block of T_BLK recurrent time steps.
# Per time step t:
#   z <- teacher_force(z, z_p[t], alpha)         (first d_Enc lanes only)
#   act = relu(z @ W1.T + h1)
#   z   = A*z + act @ W2.T + (s[t] @ C.T + h2)   (last term precomputed = u[t])
# ----------------------------------------------------------------------------
def _plrnn_block_kernel(t_blk, d_enc,
                        azp_ref,    # (T_BLK, S, d_enc)  alpha * z_p (teacher)
                        u_ref,      # (T_BLK, S, d_z)    s @ C.T + h2
                        z0_ref,     # (S, d_z)           initial latent state
                        A_ref,      # (1, d_z)
                        W1t_ref,    # (d_z, d_h)  bf16   == W1.T
                        W2t_ref,    # (d_h, d_z)  bf16   == W2.T
                        h1_ref,     # (1, d_h)
                        oma_ref,    # (1, d_z)   (1-alpha) on head lanes, else 1
                        out_ref,    # (T_BLK, S, d_z)
                        z_state,    # VMEM (S, d_z)        carried latent state
                        azp_buf):   # VMEM (T_BLK, S, d_z) alpha*z_p zero-padded
    @pl.when(pl.program_id(0) == 0)
    def _init():
        z_state[...] = z0_ref[...]
        # zero once; lanes >= d_enc are never written again, so they stay 0
        azp_buf[...] = jnp.zeros_like(azp_buf)

    # Per-block (amortized over T_BLK steps): place the pre-scaled teacher
    # signal into the first d_enc lanes of the d_z-wide VMEM buffer.
    azp_buf[:, :, 0:d_enc] = azp_ref[...]

    # hoist weight / constant loads out of the unrolled loop
    A = A_ref[...]          # (1, d_z)
    oma = oma_ref[...]      # (1, d_z)
    h1 = h1_ref[...]        # (1, d_h)
    W1t = W1t_ref[...]      # (d_z, d_h) bf16
    W2t = W2t_ref[...]      # (d_h, d_z) bf16

    z = z_state[...]        # (S, d_z) f32
    # Fully unrolled recurrence within the block (T_BLK is small -> static
    # indices, full LLO scheduler visibility).
    for tl in range(t_blk):
        # weak teacher forcing: head lanes -> (1-alpha)*z + alpha*zp, tail -> z
        z_tf = oma * z + azp_buf[tl]                                   # (S, d_z)
        # act = relu(z @ W1.T + h1)   (bf16 operands, f32 accumulation)
        act = jnp.maximum(
            jnp.dot(z_tf.astype(jnp.bfloat16), W1t,
                    preferred_element_type=jnp.float32) + h1, 0.0)     # (S, d_h)
        # z = A*z + act @ W2.T + (s @ C.T + h2)
        z = (A * z_tf
             + jnp.dot(act.astype(jnp.bfloat16), W2t,
                       preferred_element_type=jnp.float32)
             + u_ref[tl])                                              # (S, d_z)
        out_ref[tl] = z
    z_state[...] = z


def plrnn_forward_pallas(z_in, s_in, alpha, params, d_z, d_enc, t_blk=8):
    """z_in: (S, T, d_enc) teacher latents, s_in: (S, T, d_s) external inputs.
    Returns (S, T, d_z) latent trajectory (mirrors PLRNN.forward)."""
    A, W1, W2, h1, h2, C = params
    S, T, dE = z_in.shape
    d_s = s_in.shape[-1]
    d_h = W1.shape[0]
    assert dE == d_enc and d_enc <= d_z

    f32 = jnp.float32
    # batch-major -> time-major (matches torch .permute(1, 0, 2))
    z_p = jnp.transpose(z_in, (1, 0, 2)).astype(f32)          # (T, S, d_enc)
    s_t = jnp.transpose(s_in, (1, 0, 2)).astype(f32)          # (T, S, d_s)

    # Hoist the z-independent external-input projection out of the recurrence:
    # one (T*S, d_s) @ (d_s, d_z) XLA matmul over the whole sequence, fused +h2.
    u = (jnp.dot(s_t.reshape(T * S, d_s), C.T.astype(f32))
         .reshape(T, S, d_z) + h2.astype(f32))                # (T, S, d_z)

    # pre-scale the teacher signal (fused XLA elementwise, stays d_enc-wide)
    azp = (jnp.float32(alpha) * z_p)                          # (T, S, d_enc)

    # z0: zeros with the first d_enc dims set from z_p[0] (matches the module)
    z0 = jnp.zeros((S, d_z), f32).at[:, :d_enc].set(z_p[0])

    # pad T to a multiple of t_blk; padded steps run on zero inputs and are
    # sliced off afterwards (they never feed back into valid outputs).
    t_blk = max(1, min(t_blk, T))
    n_blk = pl.cdiv(T, t_blk)
    T_pad = n_blk * t_blk
    if T_pad != T:
        azp = jnp.pad(azp, ((0, T_pad - T), (0, 0), (0, 0)))
        u = jnp.pad(u, ((0, T_pad - T), (0, 0), (0, 0)))

    # (1, d_z) blend coefficient: (1 - alpha) on the first d_enc lanes, else 1
    col = jnp.arange(d_z)
    oma = jnp.where(col < d_enc, 1.0 - alpha, 1.0).astype(f32).reshape(1, d_z)

    kernel = functools.partial(_plrnn_block_kernel, t_blk, d_enc)

    out = pl.pallas_call(
        kernel,
        out_shape=jax.ShapeDtypeStruct((T_pad, S, d_z), f32),
        grid=(n_blk,),
        in_specs=[
            pl.BlockSpec((t_blk, S, d_enc), lambda i: (i, 0, 0)),      # alpha*z_p
            pl.BlockSpec((t_blk, S, d_z), lambda i: (i, 0, 0)),        # u block
            pl.BlockSpec((S, d_z), lambda i: (0, 0)),                  # z0
            pl.BlockSpec((1, d_z), lambda i: (0, 0)),                  # A
            pl.BlockSpec((d_z, d_h), lambda i: (0, 0)),                # W1.T (bf16)
            pl.BlockSpec((d_h, d_z), lambda i: (0, 0)),                # W2.T (bf16)
            pl.BlockSpec((1, d_h), lambda i: (0, 0)),                  # h1
            pl.BlockSpec((1, d_z), lambda i: (0, 0)),                  # blend vec
        ],
        out_specs=pl.BlockSpec((t_blk, S, d_z), lambda i: (i, 0, 0)),
        scratch_shapes=[pltpu.VMEM((S, d_z), f32),          # carried latent state
                        pltpu.VMEM((t_blk, S, d_z), f32)],  # alpha*z_p, padded
        compiler_params=pltpu.CompilerParams(
            dimension_semantics=("arbitrary",)),   # sequential recurrence over T
    )(azp, u, z0,
      A.reshape(1, d_z).astype(f32),
      W1.T.astype(jnp.bfloat16), W2.T.astype(jnp.bfloat16),
      h1.reshape(1, d_h).astype(f32),
      oma)

    return jnp.transpose(out[:T], (1, 0, 2))   # back to (S, T, d_z)


# ----------------------------------------------------------------------------
# Pure-JAX reference (mirrors PLRNN.forward / PLRNN_Step.forward semantics,
# same bf16-operand / f32-accumulate matmul regime as the kernel)
# ----------------------------------------------------------------------------
def plrnn_forward_ref(z_in, s_in, alpha, params, d_z, d_enc):
    A, W1, W2, h1, h2, C = params
    f32, bf16 = jnp.float32, jnp.bfloat16
    z_p = jnp.transpose(z_in, (1, 0, 2)).astype(f32)
    s_t = jnp.transpose(s_in, (1, 0, 2)).astype(f32)
    T, S, _ = z_p.shape
    W1t = W1.T.astype(bf16)
    W2t = W2.T.astype(bf16)
    z = jnp.zeros((S, d_z), f32).at[:, :d_enc].set(z_p[0])
    outs = []
    for t in range(T):
        z = z.at[:, :d_enc].set(alpha * z_p[t] + (1.0 - alpha) * z[:, :d_enc])
        act = jax.nn.relu(
            jnp.dot(z.astype(bf16), W1t, preferred_element_type=f32) + h1)
        z = (A * z
             + jnp.dot(act.astype(bf16), W2t, preferred_element_type=f32)
             + h2 + jnp.dot(s_t[t], C.T))
        outs.append(z)
    return jnp.transpose(jnp.stack(outs, axis=0), (1, 0, 2))


# ----------------------------------------------------------------------------
# Deterministic parameter init (mirrors PLRNN_Step.__init__, W_trial=False)
# ----------------------------------------------------------------------------
def init_plrnn_params(key, d_z, d_s, d_h):
    k1, k2, k3, k4, k5 = jax.random.split(key, 5)
    r1 = 1.0 / math.sqrt(d_z)
    r2 = 1.0 / math.sqrt(d_h)
    r3 = 1.0 / math.sqrt(d_s)
    A = jnp.ones((d_z,), jnp.float32) * 0.95
    W1 = jax.random.uniform(k1, (d_h, d_z), jnp.float32, -r1, r1)
    W2 = jax.random.uniform(k2, (d_z, d_h), jnp.float32, -r2, r2)
    h1 = jax.random.normal(k3, (d_h,), jnp.float32)
    h2 = jax.random.normal(k4, (d_z,), jnp.float32)
    C = jax.random.uniform(k5, (d_z, d_s), jnp.float32, -r3, r3)
    return (A, W1, W2, h1, h2, C)


if __name__ == "__main__":
    # Small shapes consistent with the module's forward:
    #   z (teacher latents): (S=batch, T=seq, d_Enc), s (inputs): (S, T, d_s)
    S, T = 4, 20
    d_z, d_enc, d_h, d_s = 32, 16, 64, 8
    alpha = 0.5

    key = jax.random.PRNGKey(0)
    kz, ks, kp = jax.random.split(key, 3)
    z_in = jax.random.normal(kz, (S, T, d_enc), jnp.float32)
    s_in = jax.random.normal(ks, (S, T, d_s), jnp.float32)
    params = init_plrnn_params(kp, d_z, d_s, d_h)

    fwd = jax.jit(plrnn_forward_pallas, static_argnames=("d_z", "d_enc", "t_blk"))
    out = fwd(z_in, s_in, alpha, params, d_z=d_z, d_enc=d_enc, t_blk=8)
    out = jax.block_until_ready(out)

    ref = plrnn_forward_ref(z_in, s_in, alpha, params, d_z, d_enc)
    assert out.shape == (S, T, d_z)
    assert jnp.allclose(out, ref, rtol=1e-3, atol=1e-3), \
        float(jnp.max(jnp.abs(out - ref)))

    print("KERNEL_OK")
</pallas_src>

<mosaic_0001>
module attributes {stable_mosaic.version = 11 : i64} {
  func.func @_plrnn_block_kernel(%arg0: i32, %arg1: memref<8x4x16xf32, #tpu.memory_space<vmem>>, %arg2: memref<8x4x32xf32, #tpu.memory_space<vmem>>, %arg3: memref<4x32xf32, #tpu.memory_space<vmem>>, %arg4: memref<1x32xf32, #tpu.memory_space<vmem>>, %arg5: memref<32x64xbf16, #tpu.memory_space<vmem>>, %arg6: memref<64x32xbf16, #tpu.memory_space<vmem>>, %arg7: memref<1x64xf32, #tpu.memory_space<vmem>>, %arg8: memref<1x32xf32, #tpu.memory_space<vmem>>, %arg9: memref<8x4x32xf32, #tpu.memory_space<vmem>>, %arg10: memref<4x32xf32, #tpu.memory_space<vmem>>, %arg11: memref<8x4x32xf32, #tpu.memory_space<vmem>>) attributes {dimension_semantics = [#tpu.dimension_semantics<arbitrary>], iteration_bounds = array<i64: 3>, scalar_prefetch = 0 : i64, scratch_operands = 2 : i64, tpu.core_type = #tpu.core_type<tc>, window_params = [{transform_indices = @transform_0, window_bounds = array<i64: 8, 4, 16>}, {transform_indices = @transform_1, window_bounds = array<i64: 8, 4, 32>}, {pipeline_mode = #tpu.pipeline_mode<synchronous>, transform_indices = @transform_2, window_bounds = array<i64: 4, 32>}, {pipeline_mode = #tpu.pipeline_mode<synchronous>, transform_indices = @transform_3, window_bounds = array<i64: 1, 32>}, {pipeline_mode = #tpu.pipeline_mode<synchronous>, transform_indices = @transform_4, window_bounds = array<i64: 32, 64>}, {pipeline_mode = #tpu.pipeline_mode<synchronous>, transform_indices = @transform_5, window_bounds = array<i64: 64, 32>}, {pipeline_mode = #tpu.pipeline_mode<synchronous>, transform_indices = @transform_6, window_bounds = array<i64: 1, 64>}, {pipeline_mode = #tpu.pipeline_mode<synchronous>, transform_indices = @transform_7, window_bounds = array<i64: 1, 32>}, {transform_indices = @transform_8, window_bounds = array<i64: 8, 4, 32>}]} {
    %c0_i32 = arith.constant 0 : i32
    %0 = arith.cmpi eq, %arg0, %c0_i32 : i32
    %1 = arith.extui %0 : i1 to i32
    %c0_i32_0 = arith.constant 0 : i32
    %2 = arith.cmpi ne, %1, %c0_i32_0 : i32
    scf.if %2 {
      %c0_108 = arith.constant 0 : index
      %c0_109 = arith.constant 0 : index
      %188 = vector.load %arg3[%c0_108, %c0_109] : memref<4x32xf32, #tpu.memory_space<vmem>>, vector<4x32xf32>
      %c0_110 = arith.constant 0 : index
      %c0_111 = arith.constant 0 : index
      %189 = vector.load %arg10[%c0_110, %c0_111] : memref<4x32xf32, #tpu.memory_space<vmem>>, vector<4x32xf32>
      tpu.vector_store %arg10[%c0_110, %c0_111], %188 {strides = array<i32>} : memref<4x32xf32, #tpu.memory_space<vmem>>, vector<4x32xf32>,
      %cst_112 = arith.constant 0.000000e+00 : f32
      %190 = vector.broadcast %cst_112 : f32 to vector<8x4x32xf32>
      %c0_113 = arith.constant 0 : index
      %c0_114 = arith.constant 0 : index
      %c0_115 = arith.constant 0 : index
      %191 = vector.load %arg11[%c0_113, %c0_114, %c0_115] : memref<8x4x32xf32, #tpu.memory_space<vmem>>, vector<8x4x32xf32>
      tpu.vector_store %arg11[%c0_113, %c0_114, %c0_115], %190 {strides = array<i32>} : memref<8x4x32xf32, #tpu.memory_space<vmem>>, vector<8x4x32xf32>,
    } else {
    }
    %c0 = arith.constant 0 : index
    %c0_1 = arith.constant 0 : index
    %c0_2 = arith.constant 0 : index
    %3 = vector.load %arg1[%c0, %c0_1, %c0_2] : memref<8x4x16xf32, #tpu.memory_space<vmem>>, vector<8x4x16xf32>
    %c0_3 = arith.constant 0 : index
    %c0_4 = arith.constant 0 : index
    %c0_5 = arith.constant 0 : index
    %4 = vector.load %arg11[%c0_3, %c0_4, %c0_5] : memref<8x4x32xf32, #tpu.memory_space<vmem>>, vector<8x4x16xf32>
    tpu.vector_store %arg11[%c0_3, %c0_4, %c0_5], %3 {strides = array<i32>} : memref<8x4x32xf32, #tpu.memory_space<vmem>>, vector<8x4x16xf32>,
    %c0_6 = arith.constant 0 : index
    %c0_7 = arith.constant 0 : index
    %5 = vector.load %arg4[%c0_6, %c0_7] : memref<1x32xf32, #tpu.memory_space<vmem>>, vector<1x32xf32>
    %c0_8 = arith.constant 0 : index
    %c0_9 = arith.constant 0 : index
    %6 = vector.load %arg8[%c0_8, %c0_9] : memref<1x32xf32, #tpu.memory_space<vmem>>, vector<1x32xf32>
    %c0_10 = arith.constant 0 : index
    %c0_11 = arith.constant 0 : index
    %7 = vector.load %arg7[%c0_10, %c0_11] : memref<1x64xf32, #tpu.memory_space<vmem>>, vector<1x64xf32>
    %c0_12 = arith.constant 0 : index
    %c0_13 = arith.constant 0 : index
    %8 = vector.load %arg5[%c0_12, %c0_13] : memref<32x64xbf16, #tpu.memory_space<vmem>>, vector<32x64xbf16>
    %c0_14 = arith.constant 0 : index
    %c0_15 = arith.constant 0 : index
    %9 = vector.load %arg6[%c0_14, %c0_15] : memref<64x32xbf16, #tpu.memory_space<vmem>>, vector<64x32xbf16>
    %c0_16 = arith.constant 0 : index
    %c0_17 = arith.constant 0 : index
    %10 = vector.load %arg10[%c0_16, %c0_17] : memref<4x32xf32, #tpu.memory_space<vmem>>, vector<4x32xf32>
    %11 = vector.broadcast %6 : vector<1x32xf32> to vector<4x32xf32>
    %12 = arith.mulf %11, %10 : vector<4x32xf32>
    %c0_18 = arith.constant 0 : index
    %c0_19 = arith.constant 0 : index
    %c0_20 = arith.constant 0 : index
    %13 = vector.load %arg11[%c0_18, %c0_19, %c0_20] : memref<8x4x32xf32, #tpu.memory_space<vmem>>, vector<1x4x32xf32>
    %14 = vector.shape_cast %13 : vector<1x4x32xf32> to vector<4x32xf32>
    %15 = arith.addf %12, %14 : vector<4x32xf32>
    %16 = arith.truncf %15 : vector<4x32xf32> to vector<4x32xbf16>
    %cst = arith.constant dense<0.000000e+00> : vector<4x64xf32>
    %17 = tpu.matmul %16, %8, %cst {dimension_numbers = #tpu.dot_dimension_numbers<[1], [0], [0], [1], [0, 0, 1, 1], [], []>} : vector<4x32xbf16>, vector<32x64xbf16>, vector<4x64xf32> -> vector<4x64xf32>
    %18 = vector.broadcast %7 : vector<1x64xf32> to vector<4x64xf32>
    %19 = arith.addf %17, %18 : vector<4x64xf32>
    %cst_21 = arith.constant 0.000000e+00 : f32
    %20 = vector.broadcast %cst_21 : f32 to vector<4x64xf32>
    %21 = arith.maximumf %19, %20 : vector<4x64xf32>
    %22 = vector.broadcast %5 : vector<1x32xf32> to vector<4x32xf32>
    %23 = arith.mulf %22, %15 : vector<4x32xf32>
    %24 = arith.truncf %21 : vector<4x64xf32> to vector<4x64xbf16>
    %cst_22 = arith.constant dense<0.000000e+00> : vector<4x32xf32>
    %25 = tpu.matmul %24, %9, %cst_22 {dimension_numbers = #tpu.dot_dimension_numbers<[1], [0], [0], [1], [0, 0, 1, 1], [], []>} : vector<4x64xbf16>, vector<64x32xbf16>, vector<4x32xf32> -> vector<4x32xf32>
    %26 = arith.addf %23, %25 : vector<4x32xf32>
    %c0_23 = arith.constant 0 : index
    %c0_24 = arith.constant 0 : index
    %c0_25 = arith.constant 0 : index
    %27 = vector.load %arg2[%c0_23, %c0_24, %c0_25] : memref<8x4x32xf32, #tpu.memory_space<vmem>>, vector<1x4x32xf32>
    %28 = vector.shape_cast %27 : vector<1x4x32xf32> to vector<4x32xf32>
    %29 = arith.addf %26, %28 : vector<4x32xf32>
    %c0_26 = arith.constant 0 : index
    %c0_27 = arith.constant 0 : index
    %c0_28 = arith.constant 0 : index
    %30 = vector.load %arg9[%c0_26, %c0_27, %c0_28] : memref<8x4x32xf32, #tpu.memory_space<vmem>>, vector<1x4x32xf32>
    %31 = vector.shape_cast %30 : vector<1x4x32xf32> to vector<4x32xf32>
    %32 = vector.shape_cast %29 : vector<4x32xf32> to vector<1x4x32xf32>
    tpu.vector_store %arg9[%c0_26, %c0_27, %c0_28], %32 {strides = array<i32>} : memref<8x4x32xf32, #tpu.memory_space<vmem>>, vector<1x4x32xf32>,
    %33 = vector.broadcast %6 : vector<1x32xf32> to vector<4x32xf32>
    %34 = arith.mulf %33, %29 : vector<4x32xf32>
    %c1 = arith.constant 1 : index
    %c0_29 = arith.constant 0 : index
    %c0_30 = arith.constant 0 : index
    %35 = vector.load %arg11[%c1, %c0_29, %c0_30] : memref<8x4x32xf32, #tpu.memory_space<vmem>>, vector<1x4x32xf32>
    %36 = vector.shape_cast %35 : vector<1x4x32xf32> to vector<4x32xf32>
    %37 = arith.addf %34, %36 : vector<4x32xf32>
    %38 = arith.truncf %37 : vector<4x32xf32> to vector<4x32xbf16>
    %cst_31 = arith.constant dense<0.000000e+00> : vector<4x64xf32>
    %39 = tpu.matmul %38, %8, %cst_31 {dimension_numbers = #tpu.dot_dimension_numbers<[1], [0], [0], [1], [0, 0, 1, 1], [], []>} : vector<4x32xbf16>, vector<32x64xbf16>, vector<4x64xf32> -> vector<4x64xf32>
    %40 = vector.broadcast %7 : vector<1x64xf32> to vector<4x64xf32>
    %41 = arith.addf %39, %40 : vector<4x64xf32>
    %cst_32 = arith.constant 0.000000e+00 : f32
    %42 = vector.broadcast %cst_32 : f32 to vector<4x64xf32>
    %43 = arith.maximumf %41, %42 : vector<4x64xf32>
    %44 = vector.broadcast %5 : vector<1x32xf32> to vector<4x32xf32>
    %45 = arith.mulf %44, %37 : vector<4x32xf32>
    %46 = arith.truncf %43 : vector<4x64xf32> to vector<4x64xbf16>
    %cst_33 = arith.constant dense<0.000000e+00> : vector<4x32xf32>
    %47 = tpu.matmul %46, %9, %cst_33 {dimension_numbers = #tpu.dot_dimension_numbers<[1], [0], [0], [1], [0, 0, 1, 1], [], []>} : vector<4x64xbf16>, vector<64x32xbf16>, vector<4x32xf32> -> vector<4x32xf32>
    %48 = arith.addf %45, %47 : vector<4x32xf32>
    %c1_34 = arith.constant 1 : index
    %c0_35 = arith.constant 0 : index
    %c0_36 = arith.constant 0 : index
    %49 = vector.load %arg2[%c1_34, %c0_35, %c0_36] : memref<8x4x32xf32, #tpu.memory_space<vmem>>, vector<1x4x32xf32>
    %50 = vector.shape_cast %49 : vector<1x4x32xf32> to vector<4x32xf32>
    %51 = arith.addf %48, %50 : vector<4x32xf32>
    %c1_37 = arith.constant 1 : index
    %c0_38 = arith.constant 0 : index
    %c0_39 = arith.constant 0 : index
    %52 = vector.load %arg9[%c1_37, %c0_38, %c0_39] : memref<8x4x32xf32, #tpu.memory_space<vmem>>, vector<1x4x32xf32>
    %53 = vector.shape_cast %52 : vector<1x4x32xf32> to vector<4x32xf32>
    %54 = vector.shape_cast %51 : vector<4x32xf32> to vector<1x4x32xf32>
    tpu.vector_store %arg9[%c1_37, %c0_38, %c0_39], %54 {strides = array<i32>} : memref<8x4x32xf32, #tpu.memory_space<vmem>>, vector<1x4x32xf32>,
    %55 = vector.broadcast %6 : vector<1x32xf32> to vector<4x32xf32>
    %56 = arith.mulf %55, %51 : vector<4x32xf32>
    %c2 = arith.constant 2 : index
    %c0_40 = arith.constant 0 : index
    %c0_41 = arith.constant 0 : index
    %57 = vector.load %arg11[%c2, %c0_40, %c0_41] : memref<8x4x32xf32, #tpu.memory_space<vmem>>, vector<1x4x32xf32>
    %58 = vector.shape_cast %57 : vector<1x4x32xf32> to vector<4x32xf32>
    %59 = arith.addf %56, %58 : vector<4x32xf32>
    %60 = arith.truncf %59 : vector<4x32xf32> to vector<4x32xbf16>
    %cst_42 = arith.constant dense<0.000000e+00> : vector<4x64xf32>
    %61 = tpu.matmul %60, %8, %cst_42 {dimension_numbers = #tpu.dot_dimension_numbers<[1], [0], [0], [1], [0, 0, 1, 1], [], []>} : vector<4x32xbf16>, vector<32x64xbf16>, vector<4x64xf32> -> vector<4x64xf32>
    %62 = vector.broadcast %7 : vector<1x64xf32> to vector<4x64xf32>
    %63 = arith.addf %61, %62 : vector<4x64xf32>
    %cst_43 = arith.constant 0.000000e+00 : f32
    %64 = vector.broadcast %cst_43 : f32 to vector<4x64xf32>
    %65 = arith.maximumf %63, %64 : vector<4x64xf32>
    %66 = vector.broadcast %5 : vector<1x32xf32> to vector<4x32xf32>
    %67 = arith.mulf %66, %59 : vector<4x32xf32>
    %68 = arith.truncf %65 : vector<4x64xf32> to vector<4x64xbf16>
    %cst_44 = arith.constant dense<0.000000e+00> : vector<4x32xf32>
    %69 = tpu.matmul %68, %9, %cst_44 {dimension_numbers = #tpu.dot_dimension_numbers<[1], [0], [0], [1], [0, 0, 1, 1], [], []>} : vector<4x64xbf16>, vector<64x32xbf16>, vector<4x32xf32> -> vector<4x32xf32>
    %70 = arith.addf %67, %69 : vector<4x32xf32>
    %c2_45 = arith.constant 2 : index
    %c0_46 = arith.constant 0 : index
    %c0_47 = arith.constant 0 : index
    %71 = vector.load %arg2[%c2_45, %c0_46, %c0_47] : memref<8x4x32xf32, #tpu.memory_space<vmem>>, vector<1x4x32xf32>
    %72 = vector.shape_cast %71 : vector<1x4x32xf32> to vector<4x32xf32>
    %73 = arith.addf %70, %72 : vector<4x32xf32>
    %c2_48 = arith.constant 2 : index
    %c0_49 = arith.constant 0 : index
    %c0_50 = arith.constant 0 : index
    %74 = vector.load %arg9[%c2_48, %c0_49, %c0_50] : memref<8x4x32xf32, #tpu.memory_space<vmem>>, vector<1x4x32xf32>
    %75 = vector.shape_cast %74 : vector<1x4x32xf32> to vector<4x32xf32>
    %76 = vector.shape_cast %73 : vector<4x32xf32> to vector<1x4x32xf32>
    tpu.vector_store %arg9[%c2_48, %c0_49, %c0_50], %76 {strides = array<i32>} : memref<8x4x32xf32, #tpu.memory_space<vmem>>, vector<1x4x32xf32>,
    %77 = vector.broadcast %6 : vector<1x32xf32> to vector<4x32xf32>
    %78 = arith.mulf %77, %73 : vector<4x32xf32>
    %c3 = arith.constant 3 : index
    %c0_51 = arith.constant 0 : index
    %c0_52 = arith.constant 0 : index
    %79 = vector.load %arg11[%c3, %c0_51, %c0_52] : memref<8x4x32xf32, #tpu.memory_space<vmem>>, vector<1x4x32xf32>
    %80 = vector.shape_cast %79 : vector<1x4x32xf32> to vector<4x32xf32>
    %81 = arith.addf %78, %80 : vector<4x32xf32>
    %82 = arith.truncf %81 : vector<4x32xf32> to vector<4x32xbf16>
    %cst_53 = arith.constant dense<0.000000e+00> : vector<4x64xf32>
    %83 = tpu.matmul %82, %8, %cst_53 {dimension_numbers = #tpu.dot_dimension_numbers<[1], [0], [0], [1], [0, 0, 1, 1], [], []>} : vector<4x32xbf16>, vector<32x64xbf16>, vector<4x64xf32> -> vector<4x64xf32>
    %84 = vector.broadcast %7 : vector<1x64xf32> to vector<4x64xf32>
    %85 = arith.addf %83, %84 : vector<4x64xf32>
    %cst_54 = arith.constant 0.000000e+00 : f32
    %86 = vector.broadcast %cst_54 : f32 to vector<4x64xf32>
    %87 = arith.maximumf %85, %86 : vector<4x64xf32>
    %88 = vector.broadcast %5 : vector<1x32xf32> to vector<4x32xf32>
    %89 = arith.mulf %88, %81 : vector<4x32xf32>
    %90 = arith.truncf %87 : vector<4x64xf32> to vector<4x64xbf16>
    %cst_55 = arith.constant dense<0.000000e+00> : vector<4x32xf32>
    %91 = tpu.matmul %90, %9, %cst_55 {dimension_numbers = #tpu.dot_dimension_numbers<[1], [0], [0], [1], [0, 0, 1, 1], [], []>} : vector<4x64xbf16>, vector<64x32xbf16>, vector<4x32xf32> -> vector<4x32xf32>
    %92 = arith.addf %89, %91 : vector<4x32xf32>
    %c3_56 = arith.constant 3 : index
    %c0_57 = arith.constant 0 : index
    %c0_58 = arith.constant 0 : index
    %93 = vector.load %arg2[%c3_56, %c0_57, %c0_58] : memref<8x4x32xf32, #tpu.memory_space<vmem>>, vector<1x4x32xf32>
    %94 = vector.shape_cast %93 : vector<1x4x32xf32> to vector<4x32xf32>
    %95 = arith.addf %92, %94 : vector<4x32xf32>
    %c3_59 = arith.constant 3 : index
    %c0_60 = arith.constant 0 : index
    %c0_61 = arith.constant 0 : index
    %96 = vector.load %arg9[%c3_59, %c0_60, %c0_61] : memref<8x4x32xf32, #tpu.memory_space<vmem>>, vector<1x4x32xf32>
    %97 = vector.shape_cast %96 : vector<1x4x32xf32> to vector<4x32xf32>
    %98 = vector.shape_cast %95 : vector<4x32xf32> to vector<1x4x32xf32>
    tpu.vector_store %arg9[%c3_59, %c0_60, %c0_61], %98 {strides = array<i32>} : memref<8x4x32xf32, #tpu.memory_space<vmem>>, vector<1x4x32xf32>,
    %99 = vector.broadcast %6 : vector<1x32xf32> to vector<4x32xf32>
    %100 = arith.mulf %99, %95 : vector<4x32xf32>
    %c4 = arith.constant 4 : index
    %c0_62 = arith.constant 0 : index
    %c0_63 = arith.constant 0 : index
    %101 = vector.load %arg11[%c4, %c0_62, %c0_63] : memref<8x4x32xf32, #tpu.memory_space<vmem>>, vector<1x4x32xf32>
    %102 = vector.shape_cast %101 : vector<1x4x32xf32> to vector<4x32xf32>
    %103 = arith.addf %100, %102 : vector<4x32xf32>
    %104 = arith.truncf %103 : vector<4x32xf32> to vector<4x32xbf16>
    %cst_64 = arith.constant dense<0.000000e+00> : vector<4x64xf32>
    %105 = tpu.matmul %104, %8, %cst_64 {dimension_numbers = #tpu.dot_dimension_numbers<[1], [0], [0], [1], [0, 0, 1, 1], [], []>} : vector<4x32xbf16>, vector<32x64xbf16>, vector<4x64xf32> -> vector<4x64xf32>
    %106 = vector.broadcast %7 : vector<1x64xf32> to vector<4x64xf32>
    %107 = arith.addf %105, %106 : vector<4x64xf32>
    %cst_65 = arith.constant 0.000000e+00 : f32
    %108 = vector.broadcast %cst_65 : f32 to vector<4x64xf32>
    %109 = arith.maximumf %107, %108 : vector<4x64xf32>
    %110 = vector.broadcast %5 : vector<1x32xf32> to vector<4x32xf32>
    %111 = arith.mulf %110, %103 : vector<4x32xf32>
    %112 = arith.truncf %109 : vector<4x64xf32> to vector<4x64xbf16>
    %cst_66 = arith.constant dense<0.000000e+00> : vector<4x32xf32>
    %113 = tpu.matmul %112, %9, %cst_66 {dimension_numbers = #tpu.dot_dimension_numbers<[1], [0], [0], [1], [0, 0, 1, 1], [], []>} : vector<4x64xbf16>, vector<64x32xbf16>, vector<4x32xf32> -> vector<4x32xf32>
    %114 = arith.addf %111, %113 : vector<4x32xf32>
    %c4_67 = arith.constant 4 : index
    %c0_68 = arith.constant 0 : index
    %c0_69 = arith.constant 0 : index
    %115 = vector.load %arg2[%c4_67, %c0_68, %c0_69] : memref<8x4x32xf32, #tpu.memory_space<vmem>>, vector<1x4x32xf32>
    %116 = vector.shape_cast %115 : vector<1x4x32xf32> to vector<4x32xf32>
    %117 = arith.addf %114, %116 : vector<4x32xf32>
    %c4_70 = arith.constant 4 : index
    %c0_71 = arith.constant 0 : index
    %c0_72 = arith.constant 0 : index
    %118 = vector.load %arg9[%c4_70, %c0_71, %c0_72] : memref<8x4x32xf32, #tpu.memory_space<vmem>>, vector<1x4x32xf32>
    %119 = vector.shape_cast %118 : vector<1x4x32xf32> to vector<4x32xf32>
    %120 = vector.shape_cast %117 : vector<4x32xf32> to vector<1x4x32xf32>
    tpu.vector_store %arg9[%c4_70, %c0_71, %c0_72], %120 {strides = array<i32>} : memref<8x4x32xf32, #tpu.memory_space<vmem>>, vector<1x4x32xf32>,
    %121 = vector.broadcast %6 : vector<1x32xf32> to vector<4x32xf32>
    %122 = arith.mulf %121, %117 : vector<4x32xf32>
    %c5 = arith.constant 5 : index
    %c0_73 = arith.constant 0 : index
    %c0_74 = arith.constant 0 : index
    %123 = vector.load %arg11[%c5, %c0_73, %c0_74] : memref<8x4x32xf32, #tpu.memory_space<vmem>>, vector<1x4x32xf32>
    %124 = vector.shape_cast %123 : vector<1x4x32xf32> to vector<4x32xf32>
    %125 = arith.addf %122, %124 : vector<4x32xf32>
    %126 = arith.truncf %125 : vector<4x32xf32> to vector<4x32xbf16>
    %cst_75 = arith.constant dense<0.000000e+00> : vector<4x64xf32>
    %127 = tpu.matmul %126, %8, %cst_75 {dimension_numbers = #tpu.dot_dimension_numbers<[1], [0], [0], [1], [0, 0, 1, 1], [], []>} : vector<4x32xbf16>, vector<32x64xbf16>, vector<4x64xf32> -> vector<4x64xf32>
    %128 = vector.broadcast %7 : vector<1x64xf32> to vector<4x64xf32>
    %129 = arith.addf %127, %128 : vector<4x64xf32>
    %cst_76 = arith.constant 0.000000e+00 : f32
    %130 = vector.broadcast %cst_76 : f32 to vector<4x64xf32>
    %131 = arith.maximumf %129, %130 : vector<4x64xf32>
    %132 = vector.broadcast %5 : vector<1x32xf32> to vector<4x32xf32>
    %133 = arith.mulf %132, %125 : vector<4x32xf32>
    %134 = arith.truncf %131 : vector<4x64xf32> to vector<4x64xbf16>
    %cst_77 = arith.constant dense<0.000000e+00> : vector<4x32xf32>
    %135 = tpu.matmul %134, %9, %cst_77 {dimension_numbers = #tpu.dot_dimension_numbers<[1], [0], [0], [1], [0, 0, 1, 1], [], []>} : vector<4x64xbf16>, vector<64x32xbf16>, vector<4x32xf32> -> vector<4x32xf32>
    %136 = arith.addf %133, %135 : vector<4x32xf32>
    %c5_78 = arith.constant 5 : index
    %c0_79 = arith.constant 0 : index
    %c0_80 = arith.constant 0 : index
    %137 = vector.load %arg2[%c5_78, %c0_79, %c0_80] : memref<8x4x32xf32, #tpu.memory_space<vmem>>, vector<1x4x32xf32>
    %138 = vector.shape_cast %137 : vector<1x4x32xf32> to vector<4x32xf32>
    %139 = arith.addf %136, %138 : vector<4x32xf32>
    %c5_81 = arith.constant 5 : index
    %c0_82 = arith.constant 0 : index
    %c0_83 = arith.constant 0 : index
    %140 = vector.load %arg9[%c5_81, %c0_82, %c0_83] : memref<8x4x32xf32, #tpu.memory_space<vmem>>, vector<1x4x32xf32>
    %141 = vector.shape_cast %140 : vector<1x4x32xf32> to vector<4x32xf32>
    %142 = vector.shape_cast %139 : vector<4x32xf32> to vector<1x4x32xf32>
    tpu.vector_store %arg9[%c5_81, %c0_82, %c0_83], %142 {strides = array<i32>} : memref<8x4x32xf32, #tpu.memory_space<vmem>>, vector<1x4x32xf32>,
    %143 = vector.broadcast %6 : vector<1x32xf32> to vector<4x32xf32>
    %144 = arith.mulf %143, %139 : vector<4x32xf32>
    %c6 = arith.constant 6 : index
    %c0_84 = arith.constant 0 : index
    %c0_85 = arith.constant 0 : index
    %145 = vector.load %arg11[%c6, %c0_84, %c0_85] : memref<8x4x32xf32, #tpu.memory_space<vmem>>, vector<1x4x32xf32>
    %146 = vector.shape_cast %145 : vector<1x4x32xf32> to vector<4x32xf32>
    %147 = arith.addf %144, %146 : vector<4x32xf32>
    %148 = arith.truncf %147 : vector<4x32xf32> to vector<4x32xbf16>
    %cst_86 = arith.constant dense<0.000000e+00> : vector<4x64xf32>
    %149 = tpu.matmul %148, %8, %cst_86 {dimension_numbers = #tpu.dot_dimension_numbers<[1], [0], [0], [1], [0, 0, 1, 1], [], []>} : vector<4x32xbf16>, vector<32x64xbf16>, vector<4x64xf32> -> vector<4x64xf32>
    %150 = vector.broadcast %7 : vector<1x64xf32> to vector<4x64xf32>
    %151 = arith.addf %149, %150 : vector<4x64xf32>
    %cst_87 = arith.constant 0.000000e+00 : f32
    %152 = vector.broadcast %cst_87 : f32 to vector<4x64xf32>
    %153 = arith.maximumf %151, %152 : vector<4x64xf32>
    %154 = vector.broadcast %5 : vector<1x32xf32> to vector<4x32xf32>
    %155 = arith.mulf %154, %147 : vector<4x32xf32>
    %156 = arith.truncf %153 : vector<4x64xf32> to vector<4x64xbf16>
    %cst_88 = arith.constant dense<0.000000e+00> : vector<4x32xf32>
    %157 = tpu.matmul %156, %9, %cst_88 {dimension_numbers = #tpu.dot_dimension_numbers<[1], [0], [0], [1], [0, 0, 1, 1], [], []>} : vector<4x64xbf16>, vector<64x32xbf16>, vector<4x32xf32> -> vector<4x32xf32>
    %158 = arith.addf %155, %157 : vector<4x32xf32>
    %c6_89 = arith.constant 6 : index
    %c0_90 = arith.constant 0 : index
    %c0_91 = arith.constant 0 : index
    %159 = vector.load %arg2[%c6_89, %c0_90, %c0_91] : memref<8x4x32xf32, #tpu.memory_space<vmem>>, vector<1x4x32xf32>
    %160 = vector.shape_cast %159 : vector<1x4x32xf32> to vector<4x32xf32>
    %161 = arith.addf %158, %160 : vector<4x32xf32>
    %c6_92 = arith.constant 6 : index
    %c0_93 = arith.constant 0 : index
    %c0_94 = arith.constant 0 : index
    %162 = vector.load %arg9[%c6_92, %c0_93, %c0_94] : memref<8x4x32xf32, #tpu.memory_space<vmem>>, vector<1x4x32xf32>
    %163 = vector.shape_cast %162 : vector<1x4x32xf32> to vector<4x32xf32>
    %164 = vector.shape_cast %161 : vector<4x32xf32> to vector<1x4x32xf32>
    tpu.vector_store %arg9[%c6_92, %c0_93, %c0_94], %164 {strides = array<i32>} : memref<8x4x32xf32, #tpu.memory_space<vmem>>, vector<1x4x32xf32>,
    %165 = vector.broadcast %6 : vector<1x32xf32> to vector<4x32xf32>
    %166 = arith.mulf %165, %161 : vector<4x32xf32>
    %c7 = arith.constant 7 : index
    %c0_95 = arith.constant 0 : index
    %c0_96 = arith.constant 0 : index
    %167 = vector.load %arg11[%c7, %c0_95, %c0_96] : memref<8x4x32xf32, #tpu.memory_space<vmem>>, vector<1x4x32xf32>
    %168 = vector.shape_cast %167 : vector<1x4x32xf32> to vector<4x32xf32>
    %169 = arith.addf %166, %168 : vector<4x32xf32>
    %170 = arith.truncf %169 : vector<4x32xf32> to vector<4x32xbf16>
    %cst_97 = arith.constant dense<0.000000e+00> : vector<4x64xf32>
    %171 = tpu.matmul %170, %8, %cst_97 {dimension_numbers = #tpu.dot_dimension_numbers<[1], [0], [0], [1], [0, 0, 1, 1], [], []>} : vector<4x32xbf16>, vector<32x64xbf16>, vector<4x64xf32> -> vector<4x64xf32>
    %172 = vector.broadcast %7 : vector<1x64xf32> to vector<4x64xf32>
    %173 = arith.addf %171, %172 : vector<4x64xf32>
    %cst_98 = arith.constant 0.000000e+00 : f32
    %174 = vector.broadcast %cst_98 : f32 to vector<4x64xf32>
    %175 = arith.maximumf %173, %174 : vector<4x64xf32>
    %176 = vector.broadcast %5 : vector<1x32xf32> to vector<4x32xf32>
    %177 = arith.mulf %176, %169 : vector<4x32xf32>
    %178 = arith.truncf %175 : vector<4x64xf32> to vector<4x64xbf16>
    %cst_99 = arith.constant dense<0.000000e+00> : vector<4x32xf32>
    %179 = tpu.matmul %178, %9, %cst_99 {dimension_numbers = #tpu.dot_dimension_numbers<[1], [0], [0], [1], [0, 0, 1, 1], [], []>} : vector<4x64xbf16>, vector<64x32xbf16>, vector<4x32xf32> -> vector<4x32xf32>
    %180 = arith.addf %177, %179 : vector<4x32xf32>
    %c7_100 = arith.constant 7 : index
    %c0_101 = arith.constant 0 : index
    %c0_102 = arith.constant 0 : index
    %181 = vector.load %arg2[%c7_100, %c0_101, %c0_102] : memref<8x4x32xf32, #tpu.memory_space<vmem>>, vector<1x4x32xf32>
    %182 = vector.shape_cast %181 : vector<1x4x32xf32> to vector<4x32xf32>
    %183 = arith.addf %180, %182 : vector<4x32xf32>
    %c7_103 = arith.constant 7 : index
    %c0_104 = arith.constant 0 : index
    %c0_105 = arith.constant 0 : index
    %184 = vector.load %arg9[%c7_103, %c0_104, %c0_105] : memref<8x4x32xf32, #tpu.memory_space<vmem>>, vector<1x4x32xf32>
    %185 = vector.shape_cast %184 : vector<1x4x32xf32> to vector<4x32xf32>
    %186 = vector.shape_cast %183 : vector<4x32xf32> to vector<1x4x32xf32>
    tpu.vector_store %arg9[%c7_103, %c0_104, %c0_105], %186 {strides = array<i32>} : memref<8x4x32xf32, #tpu.memory_space<vmem>>, vector<1x4x32xf32>,
    %c0_106 = arith.constant 0 : index
    %c0_107 = arith.constant 0 : index
    %187 = vector.load %arg10[%c0_106, %c0_107] : memref<4x32xf32, #tpu.memory_space<vmem>>, vector<4x32xf32>
    tpu.vector_store %arg10[%c0_106, %c0_107], %183 {strides = array<i32>} : memref<4x32xf32, #tpu.memory_space<vmem>>, vector<4x32xf32>,
    return
  }
  func.func @transform_0(%arg0: i32) -> (i32, i32, i32) {
    %c0_i32 = arith.constant 0 : i32
    %c0_i32_0 = arith.constant 0 : i32
    %c0_i32_1 = arith.constant 0 : i32
    return %arg0, %c0_i32, %c0_i32_0 : i32, i32, i32
  }
  func.func @transform_1(%arg0: i32) -> (i32, i32, i32) {
    %c0_i32 = arith.constant 0 : i32
    %c0_i32_0 = arith.constant 0 : i32
    %c0_i32_1 = arith.constant 0 : i32
    return %arg0, %c0_i32, %c0_i32_0 : i32, i32, i32
  }
  func.func @transform_2(%arg0: i32) -> (i32, i32) {
    %c0_i32 = arith.constant 0 : i32
    %c0_i32_0 = arith.constant 0 : i32
    %c0_i32_1 = arith.constant 0 : i32
    return %c0_i32, %c0_i32_0 : i32, i32
  }
  func.func @transform_3(%arg0: i32) -> (i32, i32) {
    %c0_i32 = arith.constant 0 : i32
    %c0_i32_0 = arith.constant 0 : i32
    %c0_i32_1 = arith.constant 0 : i32
    return %c0_i32, %c0_i32_0 : i32, i32
  }
  func.func @transform_4(%arg0: i32) -> (i32, i32) {
    %c0_i32 = arith.constant 0 : i32
    %c0_i32_0 = arith.constant 0 : i32
    %c0_i32_1 = arith.constant 0 : i32
    return %c0_i32, %c0_i32_0 : i32, i32
  }
  func.func @transform_5(%arg0: i32) -> (i32, i32) {
    %c0_i32 = arith.constant 0 : i32
    %c0_i32_0 = arith.constant 0 : i32
    %c0_i32_1 = arith.constant 0 : i32
    return %c0_i32, %c0_i32_0 : i32, i32
  }
  func.func @transform_6(%arg0: i32) -> (i32, i32) {
    %c0_i32 = arith.constant 0 : i32
    %c0_i32_0 = arith.constant 0 : i32
    %c0_i32_1 = arith.constant 0 : i32
    return %c0_i32, %c0_i32_0 : i32, i32
  }
  func.func @transform_7(%arg0: i32) -> (i32, i32) {
    %c0_i32 = arith.constant 0 : i32
    %c0_i32_0 = arith.constant 0 : i32
    %c0_i32_1 = arith.constant 0 : i32
    return %c0_i32, %c0_i32_0 : i32, i32
  }
  func.func @transform_8(%arg0: i32) -> (i32, i32, i32) {
    %c0_i32 = arith.constant 0 : i32
    %c0_i32_0 = arith.constant 0 : i32
    %c0_i32_1 = arith.constant 0 : i32
    return %arg0, %c0_i32, %c0_i32_0 : i32, i32, i32
  }
}

</mosaic_0001>

<bundles_post_ra>
// kernel: plrnn_forward_pallas.1
= control target key start
LH: loop header
LB: loop body
LE: loop exit
PB: predicated region body
PF: predicated region fallthrough
CT: control target
= control target key end

     0   :  { %s1653_s27 = smov 0   ;;  %s1936_s0 = inlined_call_operand.vmem [shape: f32[24,4,16], index: 0, kind: input, shape index: {}]   ;;  %s1937_s1 = inlined_call_operand.vmem [shape: f32[24,4,32], index: 1, kind: input, shape index: {}]   ;;  %s1938_s2 = inlined_call_operand.vmem [shape: f32[4,32], index: 2, kind: input, shape index: {}]   ;;  %s1939_s3 = inlined_call_operand.vmem [shape: f32[1,32], index: 3, kind: input, shape index: {}]   ;;  %s1940_s4 = inlined_call_operand.vmem [shape: bf16[32,64], index: 4, kind: input, shape index: {}]   ;;  %s1941_s5 = inlined_call_operand.vmem [shape: bf16[64,32], index: 5, kind: input, shape index: {}]   ;;  %s1942_s6 = inlined_call_operand.vmem [shape: f32[1,64], index: 6, kind: input, shape index: {}]   ;;  %s1943_s7 = inlined_call_operand.vmem [shape: f32[1,32], index: 7, kind: input, shape index: {}]   ;;  %s1944_s8 = inlined_call_operand.vmem [shape: f32[24,4,32], index: 8, kind: output, shape index: {}]  }
   0x1 LB: > { %s1303_s28 = sadd.s32 4294967295, %s1603_s27   ;;  %p1307_p0 = scmp.ge.s32.totalorder %s1603_s27, 1  ;;  %s1603_s27 = sphi %s1653_s27, %s18_s27  }
   0x2   : > { %p274_p1 = scmp.lt.s32.totalorder %s1603_s27, 4 }
   0x4   : > { %p275_p2 = pnand %p1307_p0, %p274_p1 }
   0x5   : > { %s1308_s29 = sshll.u32 (!%p275_p2), %s1303_s28, 3  ;;  %p1314_p4 = scmp.ne.s32.totalorder (!%p275_p2), %s1303_s28, 0 }
   0x6   : > { %278 = sbr.rel (%p275_p2) target bundleno = 3248 (0xcb0), region = 52  ;;  %p314_p3 = scmp.lt.s32.totalorder (!%p275_p2), %s1308_s29, 23 }
   0xb   : > { %s1946_s29 = smov (!%p314_p3, %s1308_s29), 23  ;;  %335 = sbr.rel (%p1314_p4) target bundleno = 22 (0x16), region = 56 }
   0xc   : > { %s1309_s30 = sshll.u32 %s1946_s29, 2 }
   0xd   : > { %s1664_s11 = scalar_lea.vmem %s1936_s0, %s1309_s30  ;;  %s1669_s14 = scalar_lea.vmem %s1937_s1, %s1309_s30 }
   0xe   : > { %s1674_s17 = scalar_lea.vmem %s1944_s8, %s1309_s30 }
  0x10   : > { %v336_v0 = vld [vmem:[%s1938_s2] sm:$0xf]  ;;  %vm337_vm0 = vcmask 257024   ;;  %v1605_v1 = vmov 0.0  }
  0x11   : > { %338 = vst.msk [vmem:[#allocation2] sm:$0xf] %vm337_vm0, %v336_v0  ;;  %339 = vst.msk [vmem:[#allocation3] sm:$0xf] %vm337_vm0, %v1605_v1 }
  0x12   : > { %340 = vst.msk [vmem:[#allocation3 + $0x4] sm:$0xf] %vm337_vm0, %v1605_v1  ;;  %341 = vst.msk [vmem:[#allocation3 + $0x8] sm:$0xf] %vm337_vm0, %v1605_v1 }
  0x13   : > { %342 = vst.msk [vmem:[#allocation3 + $0xc] sm:$0xf] %vm337_vm0, %v1605_v1  ;;  %343 = vst.msk [vmem:[#allocation3 + $0x10] sm:$0xf] %vm337_vm0, %v1605_v1 }
  0x14   : > { %344 = vst.msk [vmem:[#allocation3 + $0x14] sm:$0xf] %vm337_vm0, %v1605_v1  ;;  %345 = vst.msk [vmem:[#allocation3 + $0x18] sm:$0xf] %vm337_vm0, %v1605_v1 }
  0x15   : > { %346 = vst.msk [vmem:[#allocation3 + $0x1c] sm:$0xf] %vm337_vm0, %v1605_v1 }
  0x16 PF: > { %v1682_v2 = vld [vmem:[%s1940_s4 + $0x8] sm:$0xff]   ;;  %v1606_v3 = vmov 0.0   ;;  %v1690_v4 = vld [vmem:[%s1940_s4] sm:$0xff]   ;;  %vm1607_vm1 = vmmov 0   ;;  %vm355_vm2 = vcmask 125952   ;;  %vm408_vm3 = vcmask 261120  }
  0x17   : > { %1420 = vmatprep.subr.bf16.mxu1 %v1606_v3  ;;  %1440 = vmatprep.subr.bf16.mxu0 %v1606_v3  ;;  %v347_v5 = vld [vmem:[%s1664_s11] sm:$0xf]  ;;  %v1714_v11 = vld [vmem:[%s1941_s5 + $0x18] sm:$0xff]   ;;  %v1721_v13 = vld [vmem:[%s1941_s5 + $0x10] sm:$0xff]   ;;  %vm485_vm4 = vcmask 523264   ;;  %vm532_vm5 = vcmask 257024  }
  0x18   : > { %1421 = vmatpush3.bf16.msra.mxu1 %v1682_v2  ;;  %1424 = vmatprep.mubr.msk.bf16.mxu1 %vm1607_vm1, %v1606_v3  ;;  %356 = vst.msk [vmem:[#allocation3] sm:$0xf] %vm355_vm2, %v347_v5  ;;  %v1700_v6 = vld [vmem:[%s1943_s7] ss:$0 sm:$0xff]  ;;  %v1731_v14 = vld [vmem:[%s1941_s5 + $0x8] sm:$0xff]  }
  0x19   : > { %1422 = vmatprep.subr.bf16.mxu1 %v1606_v3  ;;  %1441 = vmatpush3.bf16.msra.mxu0 %v1682_v2  ;;  %v379_v7 = vld [vmem:[#allocation2] sm:$0xf]  ;;  %v348_v16 = vld [vmem:[%s1664_s11 + $0x4] sm:$0xf]  ;;  %v349_v38 = vld [vmem:[%s1664_s11 + $0x8] sm:$0xf] }
  0x1a   : > { %1442 = vmatprep.subr.bf16.mxu0 %v1606_v3  ;;  %1444 = vmatprep.mubr.msk.bf16.mxu0 %vm1607_vm1, %v1606_v3  ;;  %v386_v8 = vmul.f32 %v1700_v6, %v379_v7  ;;  %v1738_v15 = vld [vmem:[%s1941_s5] sm:$0xff]   ;;  %357 = vst.msk [vmem:[#allocation3 + $0x4] sm:$0xf] %vm355_vm2, %v348_v16  ;;  %358 = vst.msk [vmem:[#allocation3 + $0x8] sm:$0xf] %vm355_vm2, %v349_v38 }
  0x1b   : > { %v1747_v17 = vld [vmem:[%s1942_s6] ss:$0 sm:$0xff]  ;;  %v1328_v48 = vld [vmem:[%s1669_s14 + $0x4] sm:$0xf]  ;;  %v350_v58 = vld [vmem:[%s1664_s11 + $0xc] sm:$0xf] }
  0x1c   : > { %1423 = vmatpush3.bf16.msra.mxu1 %v1690_v4  ;;  %v1760_v25 = vld [vmem:[%s1939_s3] ss:$0 sm:$0xff]  ;;  %359 = vst.msk [vmem:[#allocation3 + $0xc] sm:$0xf] %vm355_vm2, %v350_v58 }
  0x1d   : > { %1428 = vmatprep.subr.bf16.mxu1 %v1606_v3  ;;  %1443 = vmatpush3.bf16.msra.mxu0 %v1690_v4  ;;  %v530_v28 = vld [vmem:[%s1669_s14] sm:$0xf] }
  0x1e   : > { %1448 = vmatprep.subr.bf16.mxu0 %v1606_v3 }
  0x1f   : > { %v387_v9 = vld [vmem:[#allocation3] sm:$0xf] }
  0x20   : > { %v388_v10 = vadd.f32 %v387_v9, %v386_v8  ;;  %v1332_v8 = vld [vmem:[%s1669_s14 + $0x8] sm:$0xf] }
  0x21   : > { %v536_v32 = vld [vmem:[#allocation3 + $0x4] sm:$0xf]  ;;  %v636_v52 = vld [vmem:[#allocation3 + $0x8] sm:$0xf] }
  0x22   : > { %v389_v12 = vpack.c.bf16 %v388_v10, %v388_v10  ;;  %v459_v26 = vmul.f32 %v1760_v25, %v388_v10 }
  0x23   : > { %v736_v16 = vld [vmem:[#allocation3 + $0xc] sm:$0xf] }
  0x24   : > { %1425 = vmatmul.mubr.msk.bf16.vlgmr.msra.gmra.mxu1 %vm408_vm3, %v389_v12 }
  0x25   : > { %1429 = vmatpush3.bf16.msra.mxu1 %v1714_v11  ;;  %1436 = vmatprep.mubr.msk.bf16.mxu1 %vm1607_vm1, %v1606_v3 }
  0x26   : > { %1430 = vmatprep.subr.bf16.mxu1 %v1606_v3 }
  0x29   : > { %1431 = vmatpush3.bf16.msra.mxu1 %v1721_v13 }
  0x2a   : > { %1432 = vmatprep.subr.bf16.mxu1 %v1606_v3 }
  0x2d   : > { %1433 = vmatpush3.bf16.msra.mxu1 %v1731_v14 }
  0x2e   : > { %1434 = vmatprep.subr.bf16.mxu1 %v1606_v3 }
  0x31   : > { %1435 = vmatpush3.bf16.msra.mxu1 %v1738_v15 }
  0x32   : > { %1460 = vmatprep.subr.bf16.mxu1 %v1606_v3 }
  0xe4   : > { %v446_v18 = vpop.f32.mrf.mxu1 }
  0xe5   : > { %v447_v19 = vadd.f32 %v1747_v17, %v446_v18 }
  0xe6   : > { %v1426_v20 = vpop.f32.mrf.mxu1 }
  0xe7   : > { %v452_v21 = vmax.f32 %v447_v19, 0.0 }
  0xe8   : > { %v449_v22 = vpop.f32.mrf.mxu1 }
  0xe9   : > { %v460_v23 = vpack.c.bf16 %v452_v21, %v452_v21 }
  0xea   : > { %v1427_v24 = vpop.f32.mrf.mxu1 }
  0xeb   : > { %1437 = vmatmul.mubr.msk.bf16.vlgmr.msra.gmra.mxu1 %vm485_vm4, %v460_v23  ;;  %v351_v23 = vld [vmem:[%s1664_s11 + $0x10] sm:$0xf] }
  0xec   : > { %1461 = vmatpush3.bf16.msra.mxu1 %v1682_v2  ;;  %1464 = vmatprep.mubr.msk.bf16.mxu1 %vm1607_vm1, %v1606_v3  ;;  %360 = vst.msk [vmem:[#allocation3 + $0x10] sm:$0xf] %vm355_vm2, %v351_v23 }
  0xed   : > { %1462 = vmatprep.subr.bf16.mxu1 %v1606_v3 }
  0xf0   : > { %1463 = vmatpush3.bf16.msra.mxu1 %v1690_v4 }
  0xf1   : > { %1468 = vmatprep.subr.bf16.mxu1 %v1606_v3 }
  0xf3   : > { %v836_v38 = vld [vmem:[#allocation3 + $0x10] sm:$0xf] }
 0x1ab   : > { %v523_v27 = vpop.f32.mrf.mxu1 }
 0x1ac   : > { %v529_v29 = vadd.f32 %v523_v27, %v459_v26 }
 0x1ad   : > { %v1438_v30 = vpop.f32.mrf.mxu1 }
 0x1ae   : > { %v531_v31 = vadd.f32 %v530_v28, %v529_v29 }
 0x1af   : > { %v526_v33 = vpop.f32.mrf.mxu1 }
 0x1b0   : > { %533 = vst.msk [vmem:[%s1674_s17] sm:$0xf] %vm532_vm5, %v531_v31  ;;  %v534_v34 = vmul.f32 %v1700_v6, %v531_v31 }
 0x1b1   : > { %v1439_v35 = vpop.f32.mrf.mxu1 }
 0x1b2   : > { %v537_v36 = vadd.f32 %v536_v32, %v534_v34  ;;  %v1336_v34 = vld [vmem:[%s1669_s14 + $0xc] sm:$0xf] }
 0x1b4   : > { %v538_v37 = vpack.c.bf16 %v537_v36, %v537_v36  ;;  %v583_v46 = vmul.f32 %v1760_v25, %v537_v36 }
 0x1b6   : > { %1445 = vmatmul.mubr.msk.bf16.vlgmr.msra.gmra.mxu0 %vm408_vm3, %v538_v37 }
 0x1b7   : > { %1449 = vmatpush3.bf16.msra.mxu0 %v1714_v11  ;;  %1456 = vmatprep.mubr.msk.bf16.mxu0 %vm1607_vm1, %v1606_v3 }
 0x1b8   : > { %1450 = vmatprep.subr.bf16.mxu0 %v1606_v3 }
 0x1bb   : > { %1451 = vmatpush3.bf16.msra.mxu0 %v1721_v13 }
 0x1bc   : > { %1452 = vmatprep.subr.bf16.mxu0 %v1606_v3 }
 0x1bf   : > { %1453 = vmatpush3.bf16.msra.mxu0 %v1731_v14 }
 0x1c0   : > { %1454 = vmatprep.subr.bf16.mxu0 %v1606_v3 }
 0x1c3   : > { %1455 = vmatpush3.bf16.msra.mxu0 %v1738_v15 }
 0x1c4   : > { %1480 = vmatprep.subr.bf16.mxu0 %v1606_v3 }
 0x276   : > { %v576_v39 = vpop.f32.mrf.mxu0 }
 0x277   : > { %v577_v40 = vadd.f32 %v1747_v17, %v576_v39 }
 0x278   : > { %v1446_v41 = vpop.f32.mrf.mxu0 }
 0x279   : > { %v582_v42 = vmax.f32 %v577_v40, 0.0 }
 0x27a   : > { %v579_v43 = vpop.f32.mrf.mxu0 }
 0x27b   : > { %v584_v44 = vpack.c.bf16 %v582_v42, %v582_v42 }
 0x27c   : > { %v1447_v45 = vpop.f32.mrf.mxu0 }
 0x27d   : > { %1457 = vmatmul.mubr.msk.bf16.vlgmr.msra.gmra.mxu0 %vm485_vm4, %v584_v44  ;;  %v352_v44 = vld [vmem:[%s1664_s11 + $0x14] sm:$0xf] }
 0x27e   : > { %1481 = vmatpush3.bf16.msra.mxu0 %v1682_v2  ;;  %1484 = vmatprep.mubr.msk.bf16.mxu0 %vm1607_vm1, %v1606_v3  ;;  %361 = vst.msk [vmem:[#allocation3 + $0x14] sm:$0xf] %vm355_vm2, %v352_v44 }
 0x27f   : > { %1482 = vmatprep.subr.bf16.mxu0 %v1606_v3 }
 0x282   : > { %1483 = vmatpush3.bf16.msra.mxu0 %v1690_v4 }
 0x283   : > { %1488 = vmatprep.subr.bf16.mxu0 %v1606_v3 }
 0x285   : > { %v936_v58 = vld [vmem:[#allocation3 + $0x14] sm:$0xf] }
 0x33d   : > { %v622_v47 = vpop.f32.mrf.mxu0 }
 0x33e   : > { %v628_v49 = vadd.f32 %v622_v47, %v583_v46 }
 0x33f   : > { %v1458_v50 = vpop.f32.mrf.mxu0 }
 0x340   : > { %v631_v51 = vadd.f32 %v1328_v48, %v628_v49 }
 0x341   : > { %v625_v53 = vpop.f32.mrf.mxu0 }
 0x342   : > { %1329 = vst.msk [vmem:[%s1674_s17 + $0x4] sm:$0xf] %vm532_vm5, %v631_v51  ;;  %v634_v54 = vmul.f32 %v1700_v6, %v631_v51 }
 0x343   : > { %v1459_v55 = vpop.f32.mrf.mxu0 }
 0x344   : > { %v637_v56 = vadd.f32 %v636_v52, %v634_v54  ;;  %v1340_v54 = vld [vmem:[%s1669_s14 + $0x10] sm:$0xf] }
 0x346   : > { %v638_v57 = vpack.c.bf16 %v637_v56, %v637_v56  ;;  %v683_v5 = vmul.f32 %v1760_v25, %v637_v56 }
 0x348   : > { %1465 = vmatmul.mubr.msk.bf16.vlgmr.msra.gmra.mxu1 %vm408_vm3, %v638_v57 }
 0x349   : > { %1469 = vmatpush3.bf16.msra.mxu1 %v1714_v11  ;;  %1476 = vmatprep.mubr.msk.bf16.mxu1 %vm1607_vm1, %v1606_v3 }
 0x34a   : > { %1470 = vmatprep.subr.bf16.mxu1 %v1606_v3 }
 0x34d   : > { %1471 = vmatpush3.bf16.msra.mxu1 %v1721_v13 }
 0x34e   : > { %1472 = vmatprep.subr.bf16.mxu1 %v1606_v3 }
 0x351   : > { %1473 = vmatpush3.bf16.msra.mxu1 %v1731_v14 }
 0x352   : > { %1474 = vmatprep.subr.bf16.mxu1 %v1606_v3 }
 0x355   : > { %1475 = vmatpush3.bf16.msra.mxu1 %v1738_v15 }
 0x356   : > { %1500 = vmatprep.subr.bf16.mxu1 %v1606_v3 }
 0x408   : > { %v676_v59 = vpop.f32.mrf.mxu1 }
 0x409   : > { %v677_v60 = vadd.f32 %v1747_v17, %v676_v59 }
 0x40a   : > { %v1466_v61 = vpop.f32.mrf.mxu1 }
 0x40b   : > { %v682_v62 = vmax.f32 %v677_v60, 0.0 }
 0x40c   : > { %v679_v63 = vpop.f32.mrf.mxu1 }
 0x40d   : > { %v684_v0 = vpack.c.bf16 %v682_v62, %v682_v62 }
 0x40e   : > { %v1467_v1 = vpop.f32.mrf.mxu1 }
 0x40f   : > { %1477 = vmatmul.mubr.msk.bf16.vlgmr.msra.gmra.mxu1 %vm485_vm4, %v684_v0  ;;  %v353_v0 = vld [vmem:[%s1664_s11 + $0x18] sm:$0xf] }
 0x410   : > { %1501 = vmatpush3.bf16.msra.mxu1 %v1682_v2  ;;  %1504 = vmatprep.mubr.msk.bf16.mxu1 %vm1607_vm1, %v1606_v3  ;;  %362 = vst.msk [vmem:[#allocation3 + $0x18] sm:$0xf] %vm355_vm2, %v353_v0 }
 0x411   : > { %1502 = vmatprep.subr.bf16.mxu1 %v1606_v3 }
 0x414   : > { %1503 = vmatpush3.bf16.msra.mxu1 %v1690_v4 }
 0x415   : > { %1508 = vmatprep.subr.bf16.mxu1 %v1606_v3 }
 0x417   : > { %v1036_v23 = vld [vmem:[#allocation3 + $0x18] sm:$0xf] }
 0x4cf   : > { %v722_v7 = vpop.f32.mrf.mxu1 }
 0x4d0   : > { %v728_v9 = vadd.f32 %v722_v7, %v683_v5 }
 0x4d1   : > { %v1478_v10 = vpop.f32.mrf.mxu1 }
 0x4d2   : > { %v731_v12 = vadd.f32 %v1332_v8, %v728_v9 }
 0x4d3   : > { %v725_v18 = vpop.f32.mrf.mxu1 }
 0x4d4   : > { %1333 = vst.msk [vmem:[%s1674_s17 + $0x8] sm:$0xf] %vm532_vm5, %v731_v12  ;;  %v734_v19 = vmul.f32 %v1700_v6, %v731_v12 }
 0x4d5   : > { %v1479_v20 = vpop.f32.mrf.mxu1 }
 0x4d6   : > { %v737_v21 = vadd.f32 %v736_v16, %v734_v19  ;;  %v1344_v19 = vld [vmem:[%s1669_s14 + $0x14] sm:$0xf] }
 0x4d8   : > { %v738_v22 = vpack.c.bf16 %v737_v21, %v737_v21  ;;  %v783_v32 = vmul.f32 %v1760_v25, %v737_v21 }
 0x4da   : > { %1485 = vmatmul.mubr.msk.bf16.vlgmr.msra.gmra.mxu0 %vm408_vm3, %v738_v22 }
 0x4db   : > { %1489 = vmatpush3.bf16.msra.mxu0 %v1714_v11  ;;  %1496 = vmatprep.mubr.msk.bf16.mxu0 %vm1607_vm1, %v1606_v3 }
 0x4dc   : > { %1490 = vmatprep.subr.bf16.mxu0 %v1606_v3 }
 0x4df   : > { %1491 = vmatpush3.bf16.msra.mxu0 %v1721_v13 }
 0x4e0   : > { %1492 = vmatprep.subr.bf16.mxu0 %v1606_v3 }
 0x4e3   : > { %1493 = vmatpush3.bf16.msra.mxu0 %v1731_v14 }
 0x4e4   : > { %1494 = vmatprep.subr.bf16.mxu0 %v1606_v3 }
 0x4e7   : > { %1495 = vmatpush3.bf16.msra.mxu0 %v1738_v15 }
 0x4e8   : > { %1520 = vmatprep.subr.bf16.mxu0 %v1606_v3 }
 0x59a   : > { %v776_v24 = vpop.f32.mrf.mxu0 }
 0x59b   : > { %v777_v26 = vadd.f32 %v1747_v17, %v776_v24 }
 0x59c   : > { %v1486_v27 = vpop.f32.mrf.mxu0 }
 0x59d   : > { %v782_v28 = vmax.f32 %v777_v26, 0.0 }
 0x59e   : > { %v779_v29 = vpop.f32.mrf.mxu0 }
 0x59f   : > { %v784_v30 = vpack.c.bf16 %v782_v28, %v782_v28 }
 0x5a0   : > { %v1487_v31 = vpop.f32.mrf.mxu0 }
 0x5a1   : > { %1497 = vmatmul.mubr.msk.bf16.vlgmr.msra.gmra.mxu0 %vm485_vm4, %v784_v30 }
 0x5a2   : > { %1521 = vmatpush3.bf16.msra.mxu0 %v1682_v2  ;;  %1524 = vmatprep.mubr.msk.bf16.mxu0 %vm1607_vm1, %v1606_v3 }
 0x5a3   : > { %1522 = vmatprep.subr.bf16.mxu0 %v1606_v3 }
 0x5a6   : > { %1523 = vmatpush3.bf16.msra.mxu0 %v1690_v4 }
 0x5a7   : > { %1528 = vmatprep.subr.bf16.mxu0 %v1606_v3 }
 0x661   : > { %v822_v33 = vpop.f32.mrf.mxu0 }
 0x662   : > { %v828_v35 = vadd.f32 %v822_v33, %v783_v32 }
 0x663   : > { %v1498_v36 = vpop.f32.mrf.mxu0 }
 0x664   : > { %v831_v37 = vadd.f32 %v1336_v34, %v828_v35 }
 0x665   : > { %v825_v39 = vpop.f32.mrf.mxu0 }
 0x666   : > { %1337 = vst.msk [vmem:[%s1674_s17 + $0xc] sm:$0xf] %vm532_vm5, %v831_v37  ;;  %v834_v40 = vmul.f32 %v1700_v6, %v831_v37 }
 0x667   : > { %v1499_v41 = vpop.f32.mrf.mxu0 }
 0x668   : > { %v837_v42 = vadd.f32 %v836_v38, %v834_v40  ;;  %v1348_v38 = vld [vmem:[%s1669_s14 + $0x18] sm:$0xf] }
 0x66a   : > { %v838_v43 = vpack.c.bf16 %v837_v42, %v837_v42  ;;  %v883_v52 = vmul.f32 %v1760_v25, %v837_v42 }
 0x66c   : > { %1505 = vmatmul.mubr.msk.bf16.vlgmr.msra.gmra.mxu1 %vm408_vm3, %v838_v43 }
 0x66d   : > { %1509 = vmatpush3.bf16.msra.mxu1 %v1714_v11  ;;  %1516 = vmatprep.mubr.msk.bf16.mxu1 %vm1607_vm1, %v1606_v3 }
 0x66e   : > { %1510 = vmatprep.subr.bf16.mxu1 %v1606_v3 }
 0x671   : > { %1511 = vmatpush3.bf16.msra.mxu1 %v1721_v13 }
 0x672   : > { %1512 = vmatprep.subr.bf16.mxu1 %v1606_v3 }
 0x675   : > { %1513 = vmatpush3.bf16.msra.mxu1 %v1731_v14 }
 0x676   : > { %1514 = vmatprep.subr.bf16.mxu1 %v1606_v3 }
 0x679   : > { %1515 = vmatpush3.bf16.msra.mxu1 %v1738_v15 }
 0x67a   : > { %1540 = vmatprep.subr.bf16.mxu1 %v1606_v3 }
 0x72c   : > { %v876_v45 = vpop.f32.mrf.mxu1 }
 0x72d   : > { %v877_v46 = vadd.f32 %v1747_v17, %v876_v45 }
 0x72e   : > { %v1506_v47 = vpop.f32.mrf.mxu1 }
 0x72f   : > { %v882_v48 = vmax.f32 %v877_v46, 0.0 }
 0x730   : > { %v879_v49 = vpop.f32.mrf.mxu1 }
 0x731   : > { %v884_v50 = vpack.c.bf16 %v882_v48, %v882_v48 }
 0x732   : > { %v1507_v51 = vpop.f32.mrf.mxu1 }
 0x733   : > { %1517 = vmatmul.mubr.msk.bf16.vlgmr.msra.gmra.mxu1 %vm485_vm4, %v884_v50 }
 0x734   : > { %1541 = vmatpush3.bf16.msra.mxu1 %v1682_v2  ;;  %1544 = vmatprep.mubr.msk.bf16.mxu1 %vm1607_vm1, %v1606_v3 }
 0x735   : > { %1542 = vmatprep.subr.bf16.mxu1 %v1606_v3 }
 0x738   : > { %1543 = vmatpush3.bf16.msra.mxu1 %v1690_v4 }
 0x739   : > { %1548 = vmatprep.subr.bf16.mxu1 %v1606_v3 }
 0x7f3   : > { %v922_v53 = vpop.f32.mrf.mxu1 }
 0x7f4   : > { %v928_v55 = vadd.f32 %v922_v53, %v883_v52 }
 0x7f5   : > { %v1518_v56 = vpop.f32.mrf.mxu1 }
 0x7f6   : > { %v931_v57 = vadd.f32 %v1340_v54, %v928_v55  ;;  %v1352_v54 = vld [vmem:[%s1669_s14 + $0x1c] sm:$0xf] }
 0x7f7   : > { %v925_v59 = vpop.f32.mrf.mxu1 }
 0x7f8   : > { %1341 = vst.msk [vmem:[%s1674_s17 + $0x10] sm:$0xf] %vm532_vm5, %v931_v57  ;;  %v934_v60 = vmul.f32 %v1700_v6, %v931_v57 }
 0x7f9   : > { %v1519_v61 = vpop.f32.mrf.mxu1 }
 0x7fa   : > { %v937_v62 = vadd.f32 %v936_v58, %v934_v60 }
 0x7fc   : > { %v938_v63 = vpack.c.bf16 %v937_v62, %v937_v62  ;;  %v983_v16 = vmul.f32 %v1760_v25, %v937_v62 }
 0x7fe   : > { %1525 = vmatmul.mubr.msk.bf16.vlgmr.msra.gmra.mxu0 %vm408_vm3, %v938_v63 }
 0x7ff   : > { %1529 = vmatpush3.bf16.msra.mxu0 %v1714_v11  ;;  %1536 = vmatprep.mubr.msk.bf16.mxu0 %vm1607_vm1, %v1606_v3 }
 0x800   : > { %1530 = vmatprep.subr.bf16.mxu0 %v1606_v3 }
 0x803   : > { %1531 = vmatpush3.bf16.msra.mxu0 %v1721_v13 }
 0x804   : > { %1532 = vmatprep.subr.bf16.mxu0 %v1606_v3 }
 0x807   : > { %1533 = vmatpush3.bf16.msra.mxu0 %v1731_v14 }
 0x808   : > { %1534 = vmatprep.subr.bf16.mxu0 %v1606_v3 }
 0x80b   : > { %1535 = vmatpush3.bf16.msra.mxu0 %v1738_v15 }
 0x80c   : > { %1560 = vmatprep.subr.bf16.mxu0 %v1606_v3 }
 0x8be   : > { %v976_v1 = vpop.f32.mrf.mxu0 }
 0x8bf   : > { %v977_v5 = vadd.f32 %v1747_v17, %v976_v1 }
 0x8c0   : > { %v1526_v7 = vpop.f32.mrf.mxu0 }
 0x8c1   : > { %v982_v8 = vmax.f32 %v977_v5, 0.0 }
 0x8c2   : > { %v979_v9 = vpop.f32.mrf.mxu0 }
 0x8c3   : > { %v984_v10 = vpack.c.bf16 %v982_v8, %v982_v8 }
 0x8c4   : > { %v1527_v12 = vpop.f32.mrf.mxu0 }
 0x8c5   : > { %1537 = vmatmul.mubr.msk.bf16.vlgmr.msra.gmra.mxu0 %vm485_vm4, %v984_v10 }
 0x8c6   : > { %1561 = vmatpush3.bf16.msra.mxu0 %v1682_v2  ;;  %1564 = vmatprep.mubr.msk.bf16.mxu0 %vm1607_vm1, %v1606_v3 }
 0x8c7   : > { %1562 = vmatprep.subr.bf16.mxu0 %v1606_v3 }
 0x8ca   : > { %1563 = vmatpush3.bf16.msra.mxu0 %v1690_v4  ;;  %v354_v4 = vld [vmem:[%s1664_s11 + $0x1c] sm:$0xf] }
 0x8cb   : > { %1568 = vmatprep.subr.bf16.mxu0 %v1606_v3  ;;  %363 = vst.msk [vmem:[#allocation3 + $0x1c] sm:$0xf] %vm355_vm2, %v354_v4 }
 0x8d2   : > { %v1136_v42 = vld [vmem:[#allocation3 + $0x1c] sm:$0xf] }
 0x985   : > { %v1022_v18 = vpop.f32.mrf.mxu0 }
 0x986   : > { %v1028_v20 = vadd.f32 %v1022_v18, %v983_v16 }
 0x987   : > { %v1538_v21 = vpop.f32.mrf.mxu0 }
 0x988   : > { %v1031_v22 = vadd.f32 %v1344_v19, %v1028_v20 }
 0x989   : > { %v1025_v24 = vpop.f32.mrf.mxu0 }
 0x98a   : > { %1345 = vst.msk [vmem:[%s1674_s17 + $0x14] sm:$0xf] %vm532_vm5, %v1031_v22  ;;  %v1034_v2 = vmul.f32 %v1700_v6, %v1031_v22 }
 0x98b   : > { %v1539_v26 = vpop.f32.mrf.mxu0 }
 0x98c   : > { %v1037_v27 = vadd.f32 %v1036_v23, %v1034_v2 }
 0x98e   : > { %v1038_v28 = vpack.c.bf16 %v1037_v27, %v1037_v27  ;;  %v1083_v36 = vmul.f32 %v1760_v25, %v1037_v27 }
 0x990   : > { %1545 = vmatmul.mubr.msk.bf16.vlgmr.msra.gmra.mxu1 %vm408_vm3, %v1038_v28 }
 0x991   : > { %1549 = vmatpush3.bf16.msra.mxu1 %v1714_v11  ;;  %1556 = vmatprep.mubr.msk.bf16.mxu1 %vm1607_vm1, %v1606_v3 }
 0x992   : > { %1550 = vmatprep.subr.bf16.mxu1 %v1606_v3 }
 0x995   : > { %1551 = vmatpush3.bf16.msra.mxu1 %v1721_v13 }
 0x996   : > { %1552 = vmatprep.subr.bf16.mxu1 %v1606_v3 }
 0x999   : > { %1553 = vmatpush3.bf16.msra.mxu1 %v1731_v14 }
 0x99a   : > { %1554 = vmatprep.subr.bf16.mxu1 %v1606_v3 }
 0x99d   : > { %1555 = vmatpush3.bf16.msra.mxu1 %v1738_v15 }
 0xa50   : > { %v1076_v29 = vpop.f32.mrf.mxu1 }
 0xa51   : > { %v1077_v30 = vadd.f32 %v1747_v17, %v1076_v29 }
 0xa52   : > { %v1546_v31 = vpop.f32.mrf.mxu1 }
 0xa53   : > { %v1082_v32 = vmax.f32 %v1077_v30, 0.0 }
 0xa54   : > { %v1079_v33 = vpop.f32.mrf.mxu1 }
 0xa55   : > { %v1084_v34 = vpack.c.bf16 %v1082_v32, %v1082_v32 }
 0xa56   : > { %v1547_v35 = vpop.f32.mrf.mxu1 }
 0xa57   : > { %1557 = vmatmul.mubr.msk.bf16.vlgmr.msra.gmra.mxu1 %vm485_vm4, %v1084_v34 }
 0xb17   : > { %v1122_v37 = vpop.f32.mrf.mxu1 }
 0xb18   : > { %v1128_v39 = vadd.f32 %v1122_v37, %v1083_v36 }
 0xb19   : > { %v1558_v40 = vpop.f32.mrf.mxu1 }
 0xb1a   : > { %v1131_v41 = vadd.f32 %v1348_v38, %v1128_v39 }
 0xb1b   : > { %v1125_v43 = vpop.f32.mrf.mxu1 }
 0xb1c   : > { %1349 = vst.msk [vmem:[%s1674_s17 + $0x18] sm:$0xf] %vm532_vm5, %v1131_v41  ;;  %v1134_v44 = vmul.f32 %v1700_v6, %v1131_v41 }
 0xb1d   : > { %v1559_v45 = vpop.f32.mrf.mxu1 }
 0xb1e   : > { %v1137_v46 = vadd.f32 %v1136_v42, %v1134_v44 }
 0xb20   : > { %v1138_v47 = vpack.c.bf16 %v1137_v46, %v1137_v46 }
 0xb22   : > { %1565 = vmatmul.mubr.msk.bf16.vlgmr.msra.gmra.mxu0 %vm408_vm3, %v1138_v47 }
 0xb23   : > { %1569 = vmatpush3.bf16.msra.mxu0 %v1714_v11  ;;  %1576 = vmatprep.mubr.msk.bf16.mxu0 %vm1607_vm1, %v1606_v3 }
 0xb24   : > { %1570 = vmatprep.subr.bf16.mxu0 %v1606_v3 }
 0xb27   : > { %1571 = vmatpush3.bf16.msra.mxu0 %v1721_v13  ;;  %v1183_v13 = vmul.f32 %v1760_v25, %v1137_v46 }
 0xb28   : > { %1572 = vmatprep.subr.bf16.mxu0 %v1606_v3 }
 0xb2b   : > { %1573 = vmatpush3.bf16.msra.mxu0 %v1731_v14 }
 0xb2c   : > { %1574 = vmatprep.subr.bf16.mxu0 %v1606_v3 }
 0xb2f   : > { %1575 = vmatpush3.bf16.msra.mxu0 %v1738_v15 }
 0xbe2   : > { %v1176_v6 = vpop.f32.mrf.mxu0 }
 0xbe3   : > { %v1177_v11 = vadd.f32 %v1747_v17, %v1176_v6 }
 0xbe4   : > { %v1566_v48 = vpop.f32.mrf.mxu0 }
 0xbe5   : > { %v1182_v49 = vmax.f32 %v1177_v11, 0.0 }
 0xbe6   : > { %v1179_v50 = vpop.f32.mrf.mxu0 }
 0xbe7   : > { %v1184_v51 = vpack.c.bf16 %v1182_v49, %v1182_v49 }
 0xbe8   : > { %v1567_v52 = vpop.f32.mrf.mxu0 }
 0xbe9   : > { %1577 = vmatmul.mubr.msk.bf16.vlgmr.msra.gmra.mxu0 %vm485_vm4, %v1184_v51 }
 0xca9   : > { %v1222_v53 = vpop.f32.mrf.mxu0 }
 0xcaa   : > { %v1228_v14 = vadd.f32 %v1222_v53, %v1183_v13 }
 0xcab   : > { %v1578_v55 = vpop.f32.mrf.mxu0 }
 0xcac   : > { %v1231_v3 = vadd.f32 %v1352_v54, %v1228_v14 }
 0xcad   : > { %v1225_v56 = vpop.f32.mrf.mxu0 }
 0xcae   : > { %1353 = vst.msk [vmem:[%s1674_s17 + $0x1c] sm:$0xf] %vm532_vm5, %v1231_v3  ;;  %1234 = vst.msk [vmem:[#allocation2] sm:$0xf] %vm532_vm5, %v1231_v3 }
 0xcaf   : > { %v1579_v15 = vpop.f32.mrf.mxu0 }
 0xcb0 PF: > { %s18_s27 = sadd.s32 1, %s1603_s27  }
 0xcb1   : > { %p15_p5 = scmp.ge.s32.totalorder %s18_s27, 5  }
 0xcb3   :  { %17 = sbr.rel (!%p15_p5) target bundleno = 1 (0x1), region = 110 }

</bundles_post_ra>
